<compile_context>
chip_gen: v6e
topology: v6e:2x2x1
jax: 0.10.0
libtpu: 0.0.40
codegen_flags: <defaults>
</compile_context>

<pallas_src>
import math

import jax
import jax.numpy as jnp
from jax.experimental import pallas as pl
from jax.experimental.pallas import tpu as pltpu


def _pe_add_kernel(x_ref, pe_ref, o_ref):
    # x_ref:  (TS, W) tile of (grouped) sequence rows, input dtype
    # pe_ref: (1,  W) positional slab, output dtype (VMEM-resident, sublane broadcast)
    # o_ref:  (TS, W) output tile, torch-promoted dtype
    o_ref[...] = x_ref[...].astype(o_ref.dtype) + pe_ref[...]


def make_positional_encoding_table(d_model: int, max_len: int = 512,
                                   dtype=jnp.float32) -> jnp.ndarray:
    """Builds pe of shape [max_len, 1, d_model] exactly as the torch module."""
    position = jnp.arange(max_len, dtype=jnp.float32)[:, None]            # [L, 1]
    div_term = jnp.exp(
        jnp.arange(0, d_model, 2, dtype=jnp.float32)
        * (-math.log(10000.0) / d_model)
    )                                                                      # [D/2]
    angles = position * div_term                                           # [L, D/2]
    pe = jnp.zeros((max_len, d_model), dtype=jnp.float32)
    pe = pe.at[:, 0::2].set(jnp.sin(angles))
    pe = pe.at[:, 1::2].set(jnp.cos(angles))
    return pe[:, None, :].astype(dtype)                                    # [L, 1, D]


def _vmem_capacity_bytes() -> int:
    """Physical VMEM of the current chip; conservative 64 MiB (v7x) fallback."""
    try:
        return int(getattr(pltpu.get_tpu_info(), "vmem_capacity_bytes"))
    except Exception:
        return 64 * 1024 * 1024


def _lane_group(seq_len: int, bd: int) -> int:
    """Smallest G with (G*bd) % 128 == 0 and seq_len % G == 0; else 1."""
    g = 128 // math.gcd(bd, 128)
    return g if (g > 1 and seq_len % g == 0) else 1


def _round_up(x: int, m: int) -> int:
    return ((x + m - 1) // m) * m


def _choose_row_tile(n_rows: int, row_pass_bytes: int, footprint_cap: int,
                     min_tiles: int = 2) -> int:
    """Largest sublane-aligned row tile whose double-buffered in+out footprint fits
    footprint_cap, split into >= min_tiles grid steps whenever n_rows permits."""
    max_rows = footprint_cap // max(row_pass_bytes, 1)
    max_rows = max(8, (max_rows // 8) * 8)                 # sublane alignment
    if min_tiles > 1 and n_rows >= 8 * min_tiles:
        # >= min_tiles parallel steps: frees the 2nd TensorCore on v7x; the extra
        # ~0.35 us/step is negligible on 1-TC v5e/v6e.
        max_rows = min(max_rows,
                       _round_up((n_rows + min_tiles - 1) // min_tiles, 8))
    return n_rows if max_rows >= n_rows else max_rows


def positional_encoding_forward(x: jnp.ndarray, pe: jnp.ndarray, *,
                                donate_x: bool = False) -> jnp.ndarray:
    """x: [seq_len, batch, d_model], pe: [max_len, 1, d_model] -> [seq, batch, d_model].

    Note: for a fused model, letting XLA fold this broadcast-add into an adjacent
    op avoids this kernel's full HBM read+write pass entirely; this standalone
    kernel is for when the op must run on its own.
    """
    S, B, D = x.shape
    max_len = pe.shape[0]
    assert B <= max_len, (
        f"batch ({B}) must be <= max_len ({max_len}) for pe[:batch] indexing")

    # Torch type promotion: x + pe computes/returns in the promoted dtype
    # (e.g. bf16 activations + f32 pe -> f32 output).
    out_dtype = jnp.result_type(x.dtype, pe.dtype)

    BD = B * D
    G = _lane_group(S, BD)                  # fold G seq rows -> lane-dense width
    rows, W = S // G, G * BD

    x2 = x.reshape(rows, W)                                  # contiguous, free
    pe_row = pe[:B, 0, :].astype(out_dtype).reshape(-1)       # (BD,)
    if G > 1:
        pe_row = jnp.tile(pe_row, (G,))                       # (W,)
    pe_slab = pe_row.reshape(1, W)

    in_item = jnp.dtype(x.dtype).itemsize
    out_item = jnp.dtype(out_dtype).itemsize
    row_pass_bytes = 2 * W * (in_item + out_item)              # dbl-buffered in+out

    vmem_cap = _vmem_capacity_bytes()
    # Resident-footprint cap: ~60% of physical VMEM, never above 64 MiB.
    #   v5e/v6e (128 MiB) -> 64 MiB footprint (~16 MiB tiles)
    #   v7x     (64 MiB)  -> ~38 MiB footprint (~10 MiB tiles)
    footprint_cap = max(4 * 1024 * 1024, min((vmem_cap * 3) // 5, 64 * 1024 * 1024))
    ts = _choose_row_tile(rows, row_pass_bytes, footprint_cap, min_tiles=2)
    grid = (pl.cdiv(rows, ts),)

    # vmem_limit derived from the actual footprint (+ pe + slack), clamped to chip.
    footprint = ts * row_pass_bytes + 2 * W * out_item
    vmem_limit = int(max(8 << 20, min(vmem_cap, footprint + (4 << 20))))

    # Aliasing only when shapes & dtypes match; callers should donate x to benefit.
    io_alias = {0: 0} if (donate_x and out_dtype == x.dtype) else {}

    out2 = pl.pallas_call(
        _pe_add_kernel,
        out_shape=jax.ShapeDtypeStruct((rows, W), out_dtype),
        grid_spec=pltpu.PrefetchScalarGridSpec(
            num_scalar_prefetch=0,
            grid=grid,
            in_specs=[
                pl.BlockSpec((ts, W), lambda i: (i, 0)),
                pl.BlockSpec((1, W), lambda i: (0, 0)),   # VMEM-resident pe slab
            ],
            out_specs=pl.BlockSpec((ts, W), lambda i: (i, 0)),
        ),
        compiler_params=pltpu.CompilerParams(
            dimension_semantics=("parallel",),
            vmem_limit_bytes=vmem_limit,
        ),
        input_output_aliases=io_alias,
    )(x2, pe_slab)

    return out2.reshape(S, B, D)


def positional_encoding_reference(x: jnp.ndarray, pe: jnp.ndarray) -> jnp.ndarray:
    """Plain-JAX mirror of the torch forward (eval mode, torch dtype promotion)."""
    xb = jnp.transpose(x, (1, 0, 2))            # [B, S, D]
    xb = xb + pe[: xb.shape[0]]                 # pe[:B] -> [B, 1, D], broadcast over S
    return jnp.transpose(xb, (1, 0, 2))         # [S, B, D]


if __name__ == "__main__":
    max_len = 512

    # 1) Small module-like shapes [seq, batch, d_model]; B*D=64 exercises the
    #    lane-grouping path (G=2 -> 128-wide lane-dense slab, single block).
    k1 = jax.random.PRNGKey(0)
    S1, B1, D1 = 8, 2, 32
    x1 = jax.random.normal(k1, (S1, B1, D1), dtype=jnp.float32)
    pe1 = make_positional_encoding_table(D1, max_len=max_len)
    out1 = jax.block_until_ready(positional_encoding_forward(x1, pe1))
    ref1 = positional_encoding_reference(x1, pe1)
    assert out1.shape == (S1, B1, D1) and out1.dtype == ref1.dtype
    assert jnp.allclose(out1, ref1, atol=1e-6, rtol=1e-6), "mismatch vs reference (1)"

    # 2) Multi-tile (grid >= 2) path + input/output aliasing under donation.
    k2 = jax.random.PRNGKey(1)
    S2, B2, D2 = 64, 2, 128
    x2 = jax.random.normal(k2, (S2, B2, D2), dtype=jnp.float32)
    pe2 = make_positional_encoding_table(D2, max_len=max_len)
    ref2 = positional_encoding_reference(x2, pe2)
    fwd_donating = jax.jit(
        lambda xx, pp: positional_encoding_forward(xx, pp, donate_x=True),
        donate_argnums=(0,))
    out2 = jax.block_until_ready(fwd_donating(x2, pe2))
    assert jnp.allclose(out2, ref2, atol=1e-6, rtol=1e-6), "mismatch vs reference (2)"

    # 3) bf16 activations: torch promotes x + pe to float32; so does the kernel.
    k3 = jax.random.PRNGKey(2)
    S3, B3, D3 = 16, 4, 32
    x3 = jax.random.normal(k3, (S3, B3, D3), dtype=jnp.float32).astype(jnp.bfloat16)
    pe3 = make_positional_encoding_table(D3, max_len=max_len)
    out3 = jax.block_until_ready(positional_encoding_forward(x3, pe3))
    ref3 = positional_encoding_reference(x3, pe3)
    assert out3.dtype == jnp.float32 and ref3.dtype == jnp.float32
    assert jnp.allclose(out3, ref3, atol=1e-6, rtol=1e-6), "mismatch vs reference (3)"

    print("KERNEL_OK")
</pallas_src>

<mosaic_0001>
module attributes {stable_mosaic.version = 11 : i64} {
  func.func @_pe_add_kernel(%arg0: i32, %arg1: memref<4x128xf32, #tpu.memory_space<vmem>>, %arg2: memref<1x128xf32, #tpu.memory_space<vmem>>, %arg3: memref<4x128xf32, #tpu.memory_space<vmem>>) attributes {dimension_semantics = [#tpu.dimension_semantics<parallel>], iteration_bounds = array<i64: 1>, scalar_prefetch = 0 : i64, scratch_operands = 0 : i64, tpu.core_type = #tpu.core_type<tc>, window_params = [{transform_indices = @transform_0, window_bounds = array<i64: 4, 128>}, {pipeline_mode = #tpu.pipeline_mode<synchronous>, transform_indices = @transform_1, window_bounds = array<i64: 1, 128>}, {transform_indices = @transform_2, window_bounds = array<i64: 4, 128>}]} {
    %c0 = arith.constant 0 : index
    %c0_0 = arith.constant 0 : index
    %0 = vector.load %arg1[%c0, %c0_0] : memref<4x128xf32, #tpu.memory_space<vmem>>, vector<4x128xf32>
    %c0_1 = arith.constant 0 : index
    %c0_2 = arith.constant 0 : index
    %1 = vector.load %arg2[%c0_1, %c0_2] : memref<1x128xf32, #tpu.memory_space<vmem>>, vector<1x128xf32>
    %2 = vector.broadcast %1 : vector<1x128xf32> to vector<4x128xf32>
    %3 = arith.addf %0, %2 : vector<4x128xf32>
    %c0_3 = arith.constant 0 : index
    %c0_4 = arith.constant 0 : index
    %4 = vector.load %arg3[%c0_3, %c0_4] : memref<4x128xf32, #tpu.memory_space<vmem>>, vector<4x128xf32>
    tpu.vector_store %arg3[%c0_3, %c0_4], %3 {strides = array<i32>} : memref<4x128xf32, #tpu.memory_space<vmem>>, vector<4x128xf32>,
    return
  }
  func.func @transform_0(%arg0: i32) -> (i32, i32) {
    %c0_i32 = arith.constant 0 : i32
    %c0_i32_0 = arith.constant 0 : i32
    return %arg0, %c0_i32 : i32, i32
  }
  func.func @transform_1(%arg0: i32) -> (i32, i32) {
    %c0_i32 = arith.constant 0 : i32
    %c0_i32_0 = arith.constant 0 : i32
    %c0_i32_1 = arith.constant 0 : i32
    return %c0_i32, %c0_i32_0 : i32, i32
  }
  func.func @transform_2(%arg0: i32) -> (i32, i32) {
    %c0_i32 = arith.constant 0 : i32
    %c0_i32_0 = arith.constant 0 : i32
    return %arg0, %c0_i32 : i32, i32
  }
}

</mosaic_0001>

<bundles_post_ra>
// kernel: tpu_custom_call.1
= control target key start
LH: loop header
LB: loop body
LE: loop exit
PB: predicated region body
PF: predicated region fallthrough
CT: control target
= control target key end

     0   :  { %7 = vsyncpa [#allocation3], 0  ;;  %s122_s0 = inlined_call_operand.hbm [shape: f32[4,128], index: 0, kind: input, shape index: {}]   ;;  %s123_s1 = inlined_call_operand.vmem [shape: f32[1,128], index: 1, kind: input, shape index: {}]   ;;  %s124_s2 = inlined_call_operand.hbm [shape: f32[4,128], index: 2, kind: output, shape index: {}]  }
   0x1   :  { %8 = vsyncpa [#allocation4], 0  ;;  %s96_s9 = smov [#allocation2]  }
   0x2   :  { %s15_s10 = sshll.u32 %s96_s9, 4  ;;  %s16_s10 = int_to_ptr.vmem [resolvable:$true] %s15_s10 }
   0x3   :  { %s60_s11 = scalar_lea.vmem %s16_s10, 64  ;;  %p65_p1 = scmp.lt.s32.totalorder %s16_s10, %s16_s10 }
   0x4   :  { %p61_p0 = scmp.ne.s32.totalorder %s16_s10, %s60_s11  ;;  %p66_p2 = scmp.lt.s32.totalorder %s60_s11, %s60_s11 }
   0x6   :  { %p67_p3 = por %p66_p2, %p65_p1 }
   0x8   :  { %p68_p4 = pnand %p67_p3, %p61_p0 }
   0xa   :  { %71 = shalt.err (!%p68_p4)
}
   0xb   :  { %18 = dma.hbm_to_vmem [thread:$0]  %s122_s0, 64, %s16_s10, [#allocation3]  }
   0xc   :  { %92 = dma.done.wait [#allocation3], 64  }
   0xd   :  { %93 = vsyncadd [#allocation3], 4294967232  ;;  %s97_s14 = smov [#allocation5]   ;;  %v24_v0 = vld [vmem:[#allocation2] sm:$0xf] }
   0xe   :  { %s40_s15 = sshll.u32 %s97_s14, 4  ;;  %v49_v1 = vld [vmem:[%s123_s1] ss:$0 sm:$0xff]  ;;  %s41_s15 = int_to_ptr.vmem [resolvable:$true] %s40_s15 }
   0xf   :  { %v32_v2 = vadd.f32 %v49_v1, %v24_v0  ;;  %s72_s18 = scalar_lea.vmem %s41_s15, 64  ;;  %p77_p6 = scmp.lt.s32.totalorder %s41_s15, %s41_s15 }
  0x10   :  { %p73_p5 = scmp.ne.s32.totalorder %s41_s15, %s72_s18  ;;  %p78_p7 = scmp.lt.s32.totalorder %s72_s18, %s72_s18 }
  0x11   :  { %33 = vst [vmem:[#allocation5] sm:$0xf] %v32_v2 }
  0x12   :  { %p79_p8 = por %p78_p7, %p77_p6 }
  0x14   :  { %p80_p9 = pnand %p79_p8, %p73_p5 }
  0x16   :  { %83 = shalt.err (!%p80_p9)
}
  0x17   :  { %43 = dma.vmem_to_hbm [thread:$0]  %s41_s15, 64, %s124_s2, [#allocation4]  }
  0x18   :  { %94 = dma.done.wait [#allocation4], 64  }
  0x19   :  { %95 = vsyncadd [#allocation4], 4294967232 }
  0x1a   :  { %47 = vsyncpa [#allocation3], 1 }
  0x1b   :  { %48 = vsyncpa [#allocation4], 1 }

</bundles_post_ra>
